<compile_context>
chip_gen: v7x
topology: tpu7x:2x2x1
jax: 0.10.0
libtpu: 0.0.40
codegen_flags: <defaults>
</compile_context>

<pallas_src>
import functools

import jax
import jax.numpy as jnp
from jax.experimental import pallas as pl
from jax.experimental.pallas import tpu as pltpu


def gate_kernel(x_ref, wt_ref, weights_ref, indices_ref, *, topk, route_scale):
    """scores = sigmoid(x @ W^T); top-k select; normalize; scale."""
    # Plain MXU matmul: x (T, D) @ W^T (D, E) -> logits (T, E), f32 accumulate.
    logits = jnp.dot(x_ref[...], wt_ref[...],
                     preferred_element_type=jnp.float32)          # (T, E) f32

    T, E = logits.shape
    expert_ids = jax.lax.broadcasted_iota(jnp.int32, (T, E), 1)
    NEG = jnp.float32(-1e30)  # finite sentinel (avoid -inf / NaN paths)

    # Iterative top-k on the raw logits (sigmoid is monotonic, so ordering is
    # identical to top-k on sigmoid(logits)).  Ties pick the smallest expert
    # index, matching jax.lax.top_k / torch.topk on distinct values.
    masked = logits
    top_vals = []
    top_idx = []
    for _ in range(topk):
        m = jnp.max(masked, axis=-1, keepdims=True)                    # (T, 1)
        idx = jnp.min(jnp.where(masked == m, expert_ids, E),
                      axis=-1, keepdims=True).astype(jnp.int32)        # (T, 1)
        top_vals.append(m)
        top_idx.append(idx)
        masked = jnp.where(expert_ids == idx, NEG, masked)

    sel_logits = jnp.concatenate(top_vals, axis=-1)                    # (T, K)
    sel_idx = jnp.concatenate(top_idx, axis=-1)                        # (T, K)

    # Sigmoid only on the K selected logits (EUP).
    sel_scores = jax.nn.sigmoid(sel_logits)
    denom = jnp.sum(sel_scores, axis=-1, keepdims=True)
    inv = pl.reciprocal(denom, approx=True)        # EUP vrcp (cheap)
    inv = inv * (2.0 - denom * inv)                # one Newton step -> ~f32 acc
    scale = inv * jnp.float32(route_scale)         # fold route_scale in (T, 1)

    # One full-width store per output.
    weights_ref[...] = (sel_scores * scale).astype(weights_ref.dtype)
    indices_ref[...] = sel_idx


def _choose_tile_t(T, D, E, x_bytes, w_bytes):
    """Largest token tile fitting a conservative (v7x-safe) VMEM budget."""
    budget = 16 * 1024 * 1024                    # working-set budget per step
    fixed = 2 * E * D * w_bytes                  # resident weight (2 bufs worst case)
    per_row = 2 * D * x_bytes + 32 * E + 64      # 2x x-tile + f32 intermediates
    avail = max(budget - fixed, 0)
    t = max(avail // per_row, 8)
    t = min(int(t), 2048)
    if T <= t:
        return T                                 # single full block
    if t >= 128:
        return (t // 128) * 128                  # fill MXU M dim
    return max((t // 8) * 8, 8)


def gate_forward(x, weight, topk_experts, route_scale=1.0, tile_t=None):
    """Pallas wrapper. x: (T, dim) ; weight: (n_experts, dim)."""
    T, D = x.shape
    E, D2 = weight.shape
    assert D == D2, "x and weight feature dims must match"
    assert E > 1, "Number of experts must be greater than 1"
    assert 1 <= topk_experts <= E, "topk_experts must be in [1, n_experts]"
    K = topk_experts

    if tile_t is None:
        tile_t = _choose_tile_t(T, D, E, x.dtype.itemsize, weight.dtype.itemsize)

    grid = (pl.cdiv(T, tile_t),)

    # Transpose weight once outside the kernel: [E, D] -> [D, E].  Tiny XLA op;
    # lets the kernel issue a standard MXU contraction with no transpose.
    w_t = weight.T

    kernel = functools.partial(gate_kernel, topk=K,
                               route_scale=float(route_scale))

    # Explicit VMEM budget (v7x default-scoped limit is the binding one).
    est_vmem = (2 * tile_t * D * x.dtype.itemsize      # double-buffered x tile
                + 2 * E * D * weight.dtype.itemsize    # resident weight
                + 8 * tile_t * E * 4                   # f32 logits + top-k temps
                + 4 * tile_t * K * 8)                  # outputs (double-buffered)
    vmem_limit = int(min(48 * 1024 * 1024, max(32 * 1024 * 1024, est_vmem)))

    # NOTE: for production sizes, pad E (n_experts) to a multiple of 128 in the
    # caller for full MXU-lane utilization; not done here for the toy E=8.
    weights, indices = pl.pallas_call(
        kernel,
        out_shape=(
            jax.ShapeDtypeStruct((T, K), jnp.float32),
            jax.ShapeDtypeStruct((T, K), jnp.int32),
        ),
        grid_spec=pltpu.PrefetchScalarGridSpec(
            num_scalar_prefetch=0,
            grid=grid,
            in_specs=[
                pl.BlockSpec((tile_t, D), lambda i: (i, 0)),   # token tile
                pl.BlockSpec((D, E), lambda i: (0, 0)),        # resident W^T
            ],
            out_specs=(
                pl.BlockSpec((tile_t, K), lambda i: (i, 0)),
                pl.BlockSpec((tile_t, K), lambda i: (i, 0)),
            ),
        ),
        compiler_params=pltpu.CompilerParams(
            dimension_semantics=("parallel",),   # megacore-shard token tiles
            vmem_limit_bytes=vmem_limit,
        ),
    )(x, w_t)
    return weights, indices


if __name__ == "__main__":
    # Small shapes consistent with the module: dim=32, n_experts=8, topk=2,
    # 8 tokens in the flattened batch.
    dim = 32
    n_experts = 8
    topk_experts = 2
    route_scale = 1.0
    tokens = 8

    key = jax.random.PRNGKey(0)
    kx, kw = jax.random.split(key)
    # bf16 inputs feed the MXU directly (no in-kernel upcast); all post-matmul
    # elementwise work stays in f32 (required on v5e, fine everywhere).
    x = jax.random.normal(kx, (tokens, dim), dtype=jnp.float32).astype(jnp.bfloat16)
    weight = jax.random.normal(kw, (n_experts, dim),
                               dtype=jnp.float32).astype(jnp.bfloat16)

    weights, indices = gate_forward(x, weight, topk_experts, route_scale)
    jax.block_until_ready((weights, indices))

    # Pure-JAX reference check (same semantics as the PyTorch Gate.forward).
    logits_ref = jnp.dot(x, weight.T, preferred_element_type=jnp.float32)
    scores_ref = jax.nn.sigmoid(logits_ref)
    top_vals, top_idx = jax.lax.top_k(scores_ref, topk_experts)
    ref_w = top_vals / jnp.sum(top_vals, axis=-1, keepdims=True) * route_scale

    assert jnp.array_equal(indices, top_idx), "indices mismatch"
    assert jnp.allclose(weights, ref_w, atol=1e-4, rtol=1e-4), "weights mismatch"

    print("KERNEL_OK")
</pallas_src>

<mosaic_0001>
module attributes {stable_mosaic.version = 11 : i64} {
  func.func @gate_kernel(%arg0: i32, %arg1: memref<8x32xbf16, #tpu.memory_space<vmem>>, %arg2: memref<32x8xbf16, #tpu.memory_space<vmem>>, %arg3: memref<8x2xf32, #tpu.memory_space<vmem>>, %arg4: memref<8x2xi32, #tpu.memory_space<vmem>>) attributes {dimension_semantics = [#tpu.dimension_semantics<parallel>], iteration_bounds = array<i64: 1>, scalar_prefetch = 0 : i64, scratch_operands = 0 : i64, tpu.core_type = #tpu.core_type<tc>, window_params = [{transform_indices = @transform_0, window_bounds = array<i64: 8, 32>}, {pipeline_mode = #tpu.pipeline_mode<synchronous>, transform_indices = @transform_1, window_bounds = array<i64: 32, 8>}, {transform_indices = @transform_2, window_bounds = array<i64: 8, 2>}, {transform_indices = @transform_3, window_bounds = array<i64: 8, 2>}]} {
    %c0 = arith.constant 0 : index
    %c0_0 = arith.constant 0 : index
    %0 = vector.load %arg1[%c0, %c0_0] : memref<8x32xbf16, #tpu.memory_space<vmem>>, vector<8x32xbf16>
    %c0_1 = arith.constant 0 : index
    %c0_2 = arith.constant 0 : index
    %1 = vector.load %arg2[%c0_1, %c0_2] : memref<32x8xbf16, #tpu.memory_space<vmem>>, vector<32x8xbf16>
    %cst = arith.constant dense<0.000000e+00> : vector<8x8xf32>
    %2 = tpu.matmul %0, %1, %cst {dimension_numbers = #tpu.dot_dimension_numbers<[1], [0], [0], [1], [0, 0, 1, 1], [], []>} : vector<8x32xbf16>, vector<32x8xbf16>, vector<8x8xf32> -> vector<8x8xf32>
    %3 = tpu.iota {dimensions = array<i32: 1>} : vector<8x8xi32>
    %cst_3 = arith.constant dense<0xFF800000> : vector<8xf32>
    %4 = vector.multi_reduction <maximumf>, %2, %cst_3 [1] : vector<8x8xf32> to vector<8xf32>
    %5 = vector.shape_cast %4 : vector<8xf32> to vector<8x1xf32>
    %6 = vector.broadcast %5 : vector<8x1xf32> to vector<8x8xf32>
    %7 = arith.cmpf oeq, %2, %6 : vector<8x8xf32>
    %c8_i32 = arith.constant 8 : i32
    %8 = vector.broadcast %c8_i32 : i32 to vector<8x8xi32>
    %9 = arith.select %7, %3, %8 : vector<8x8xi1>, vector<8x8xi32>
    %cst_4 = arith.constant dense<2147483647> : vector<8xi32>
    %10 = vector.multi_reduction <minsi>, %9, %cst_4 [1] : vector<8x8xi32> to vector<8xi32>
    %11 = vector.shape_cast %10 : vector<8xi32> to vector<8x1xi32>
    %12 = vector.broadcast %11 : vector<8x1xi32> to vector<8x8xi32>
    %13 = arith.cmpi eq, %3, %12 : vector<8x8xi32>
    %cst_5 = arith.constant -1.000000e+30 : f32
    %14 = vector.broadcast %cst_5 : f32 to vector<8x8xf32>
    %15 = arith.select %13, %14, %2 : vector<8x8xi1>, vector<8x8xf32>
    %cst_6 = arith.constant dense<0xFF800000> : vector<8xf32>
    %16 = vector.multi_reduction <maximumf>, %15, %cst_6 [1] : vector<8x8xf32> to vector<8xf32>
    %17 = vector.shape_cast %16 : vector<8xf32> to vector<8x1xf32>
    %18 = vector.broadcast %17 : vector<8x1xf32> to vector<8x8xf32>
    %19 = arith.cmpf oeq, %15, %18 : vector<8x8xf32>
    %c8_i32_7 = arith.constant 8 : i32
    %20 = vector.broadcast %c8_i32_7 : i32 to vector<8x8xi32>
    %21 = arith.select %19, %3, %20 : vector<8x8xi1>, vector<8x8xi32>
    %cst_8 = arith.constant dense<2147483647> : vector<8xi32>
    %22 = vector.multi_reduction <minsi>, %21, %cst_8 [1] : vector<8x8xi32> to vector<8xi32>
    %23 = vector.shape_cast %22 : vector<8xi32> to vector<8x1xi32>
    %24 = tpu.concatenate %5, %17 in 1 : vector<8x1xf32>, vector<8x1xf32> -> vector<8x2xf32>
    %25 = tpu.concatenate %11, %23 in 1 : vector<8x1xi32>, vector<8x1xi32> -> vector<8x2xi32>
    %26 = arith.negf %24 : vector<8x2xf32>
    %27 = math.exp %26 : vector<8x2xf32>
    %cst_9 = arith.constant 1.000000e+00 : f32
    %28 = vector.broadcast %cst_9 : f32 to vector<8x2xf32>
    %29 = arith.addf %28, %27 : vector<8x2xf32>
    %30 = arith.divf %28, %29 : vector<8x2xf32>
    %cst_10 = arith.constant dense<0.000000e+00> : vector<8xf32>
    %31 = vector.multi_reduction <add>, %30, %cst_10 [1] : vector<8x2xf32> to vector<8xf32>
    %32 = vector.shape_cast %31 : vector<8xf32> to vector<8x1xf32>
    %33 = tpu.reciprocal %32 {approx = true} : vector<8x1xf32> -> vector<8x1xf32>
    %34 = arith.mulf %32, %33 : vector<8x1xf32>
    %cst_11 = arith.constant 2.000000e+00 : f32
    %35 = vector.broadcast %cst_11 : f32 to vector<8x1xf32>
    %36 = arith.subf %35, %34 : vector<8x1xf32>
    %37 = arith.mulf %33, %36 : vector<8x1xf32>
    %cst_12 = arith.constant 1.000000e+00 : f32
    %38 = vector.broadcast %cst_12 : f32 to vector<8x1xf32>
    %39 = arith.mulf %37, %38 : vector<8x1xf32>
    %40 = vector.broadcast %39 : vector<8x1xf32> to vector<8x2xf32>
    %41 = arith.mulf %30, %40 : vector<8x2xf32>
    %c0_13 = arith.constant 0 : index
    %c0_14 = arith.constant 0 : index
    %42 = vector.load %arg3[%c0_13, %c0_14] : memref<8x2xf32, #tpu.memory_space<vmem>>, vector<8x2xf32>
    tpu.vector_store %arg3[%c0_13, %c0_14], %41 {strides = array<i32>} : memref<8x2xf32, #tpu.memory_space<vmem>>, vector<8x2xf32>,
    %c0_15 = arith.constant 0 : index
    %c0_16 = arith.constant 0 : index
    %43 = vector.load %arg4[%c0_15, %c0_16] : memref<8x2xi32, #tpu.memory_space<vmem>>, vector<8x2xi32>
    tpu.vector_store %arg4[%c0_15, %c0_16], %25 {strides = array<i32>} : memref<8x2xi32, #tpu.memory_space<vmem>>, vector<8x2xi32>,
    return
  }
  func.func @transform_0(%arg0: i32) -> (i32, i32) {
    %c0_i32 = arith.constant 0 : i32
    %c0_i32_0 = arith.constant 0 : i32
    return %arg0, %c0_i32 : i32, i32
  }
  func.func @transform_1(%arg0: i32) -> (i32, i32) {
    %c0_i32 = arith.constant 0 : i32
    %c0_i32_0 = arith.constant 0 : i32
    %c0_i32_1 = arith.constant 0 : i32
    return %c0_i32, %c0_i32_0 : i32, i32
  }
  func.func @transform_2(%arg0: i32) -> (i32, i32) {
    %c0_i32 = arith.constant 0 : i32
    %c0_i32_0 = arith.constant 0 : i32
    return %arg0, %c0_i32 : i32, i32
  }
  func.func @transform_3(%arg0: i32) -> (i32, i32) {
    %c0_i32 = arith.constant 0 : i32
    %c0_i32_0 = arith.constant 0 : i32
    return %arg0, %c0_i32 : i32, i32
  }
}

</mosaic_0001>

<bundles_post_ra>
// kernel: tpu_custom_call.1
= control target key start
LH: loop header
LB: loop body
LE: loop exit
PB: predicated region body
PF: predicated region fallthrough
CT: control target
= control target key end

     0   :  { %v173_v0 = vmov 0.0   ;;  %vm174_vm0 = vmmov 0   ;;  %vm31_vm1 = vcmask 261120   ;;  %vm77_vm2 = vcmask 64512   ;;  %s219_s1 = inlined_call_operand.vmem [shape: bf16[32,8], index: 1, kind: input, shape index: {}]   ;;  %s220_s0 = inlined_call_operand.vmem [shape: bf16[8,32], index: 0, kind: input, shape index: {}]   ;;  %s221_s2 = inlined_call_operand.vmem [shape: f32[8,2], index: 2, kind: output, shape index: {0}]   ;;  %s222_s3 = inlined_call_operand.vmem [shape: s32[8,2], index: 3, kind: output, shape index: {1}]  }
   0x1   :  { %155 = vmatprep.subr.bf16.mxu0 %v173_v0  ;;  %v165_v1 = vld [vmem:[%s219_s1] sm:$0xff]   ;;  %159 = vmatprep.mubr.msk.bf16.mxu0 %vm174_vm0, %v173_v0  ;;  %v166_v2 = vld [vmem:[%s219_s1 + $0x8] sm:$0xff]   ;;  %v75_v9 = vlaneseq  ;;  %vm120_vm6 = vcmask 7168   ;;  %vm129_vm8 = vcmask 15360  }
   0x2   :  { %156 = vmatpush3.bf16.msra.mxu0 %v165_v1  ;;  %v14_v3 = vld [vmem:[%s220_s0] sm:$0xf] }
   0x3   :  { %157 = vmatprep.subr.bf16.mxu0 %v173_v0  ;;  %v76_v10 = vand.u32 127, %v75_v9 }
   0x6   :  { %158 = vmatpush3.bf16.msra.mxu0 %v166_v2 }
   0x9   :  { %160 = vmatmul.mubr.msk.bf16.vlgmr.msra.gmra.mrb[0].mxu0 %vm31_vm1, %v14_v3 }
  0xdc   :  { %v69_v4 = vpop.f32.mrb[0].mxu0 }
  0xdd   :  { %v161_v5 = vpop.f32.mrb[1].mxu0  ;;  %v78_v6 = vsel %vm77_vm2, %v69_v4, -inf }
  0xde   :  { %79 = vmax.xlane.f32.xlu0 %v78_v6  ;;  %v72_v7 = vpop.f32.mrb[2].mxu0 }
  0xdf   :  { %v162_v8 = vpop.f32.mrb[3].mxu0 }
 0x16b   :  { %v80_v11 = vpop.xlane.xlu0 %79 }
 0x16c   :  { %vm81_vm3 = vcmp.eq.f32.partialorder %v69_v4, %v80_v11 }
 0x16d   :  { %v82_v12 = vsel %vm81_vm3, %v76_v10, 8 }
 0x16e   :  { %v83_v13 = vsel %vm77_vm2, %v82_v12, 2147483647 }
 0x16f   :  { %v85_v14 = vshra.s32 %v83_v13, 16  ;;  %v84_v16 = vand.u32 65535, %v83_v13 }
 0x171   :  { %v87_v15 = vcvt.s32.f32 %v85_v14  ;;  %v86_v18 = vcvt.s32.f32 %v84_v16 }
 0x173   :  { %88 = vmin.xlane.f32.xlu0 %v87_v15 }
 0x200   :  { %v89_v17 = vpop.xlane.xlu0 %88 }
 0x201   :  { %vm90_vm4 = vcmp.eq.f32.partialorder %v87_v15, %v89_v17  ;;  %v95_v20 = vcvt.f32.s32 %v89_v17 }
 0x202   :  { %v91_v19 = vsel %vm90_vm4, %v86_v18, inf }
 0x203   :  { %92 = vmin.xlane.f32.xlu1 %v91_v19  ;;  %v96_v22 = vshll.u32 %v95_v20, 16 }
 0x290   :  { %v93_v21 = vpop.xlane.xlu1 %92 }
 0x291   :  { %v94_v23 = vcvt.f32.s32 %v93_v21 }
 0x293   :  { %v97_v24 = vadd.s32 %v96_v22, %v94_v23 }
 0x295   :  { %vm98_vm5 = vcmp.eq.s32.totalorder %v76_v10, %v97_v24 }
 0x296   :  { %v99_v25 = vsel %vm98_vm5, -1e+30, %v69_v4 }
 0x297   :  { %v100_v26 = vsel %vm77_vm2, %v99_v25, -inf }
 0x298   :  { %101 = vmax.xlane.f32.xlu1 %v100_v26 }
 0x325   :  { %v102_v27 = vpop.xlane.xlu1 %101 }
 0x326   :  { %vm103_vm7 = vcmp.eq.f32.partialorder %v99_v25, %v102_v27  ;;  %v121_v28 = vsel %vm120_vm6, %v80_v11, %v102_v27 }
 0x327   :  { %v104_v29 = vsel %vm103_vm7, %v76_v10, 8  ;;  %v151_v30 = vmul.f32 -1.442695, %v121_v28 }
 0x328   :  { %v105_v31 = vsel %vm77_vm2, %v104_v29, 2147483647 }
 0x329   :  { %167 = vpow2.f32 %v151_v30  ;;  %v107_v32 = vshra.s32 %v105_v31, 16  ;;  %v106_v38 = vand.u32 65535, %v105_v31 }
 0x32b   :  { %v109_v33 = vcvt.s32.f32 %v107_v32  ;;  %v108_v40 = vcvt.s32.f32 %v106_v38 }
 0x32d   :  { %110 = vmin.xlane.f32.xlu0 %v109_v33 }
 0x333   :  { %v168_v34 = vpop.eup %167 }
 0x334   :  { %v126_v35 = vadd.f32 1.0, %v168_v34 }
 0x336   :  { %169 = vrcp.f32 %v126_v35 }
 0x340   :  { %v170_v36 = vpop.eup %169 }
 0x341   :  { %v130_v37 = vsel %vm129_vm8, %v170_v36, 0.0 }
 0x342   :  { %131 = vadd.xlane.f32.xlu1 %v130_v37 }
 0x3ba   :  { %v111_v39 = vpop.xlane.xlu0 %110 }
 0x3bb   :  { %vm112_vm9 = vcmp.eq.f32.partialorder %v109_v33, %v111_v39  ;;  %v117_v48 = vcvt.f32.s32 %v111_v39 }
 0x3bc   :  { %v113_v41 = vsel %vm112_vm9, %v108_v40, inf }
 0x3bd   :  { %114 = vmin.xlane.f32.xlu0 %v113_v41  ;;  %v118_v50 = vshll.u32 %v117_v48, 16 }
 0x3cf   :  { %v132_v42 = vpop.xlane.xlu1 %131 }
 0x3d0   :  { %171 = vrcp.f32 %v132_v42 }
 0x3da   :  { %v172_v43 = vpop.eup %171 }
 0x3db   :  { %v134_v44 = vmul.f32 %v172_v43, %v132_v42 }
 0x3dd   :  { %v135_v45 = vsub.f32 2.0, %v134_v44 }
 0x3df   :  { %v136_v46 = vmul.f32 %v172_v43, %v135_v45 }
 0x3e1   :  { %v137_v47 = vmul.f32 %v170_v36, %v136_v46 }
 0x3e3   :  { %138 = vst.msk [vmem:[%s221_s2] sm:$0xff] %vm129_vm8, %v137_v47 }
 0x44a   :  { %v115_v49 = vpop.xlane.xlu0 %114 }
 0x44b   :  { %v116_v51 = vcvt.f32.s32 %v115_v49 }
 0x44d   :  { %v119_v52 = vadd.s32 %v118_v50, %v116_v51 }
 0x44f   :  { %v122_v53 = vsel %vm120_vm6, %v97_v24, %v119_v52 }
 0x450   :  { %139 = vst.msk [vmem:[%s222_s3] sm:$0xff] %vm129_vm8, %v122_v53 }

</bundles_post_ra>
